<compile_context>
chip_gen: v5e
topology: v5e:2x2
jax: 0.10.0
libtpu: 0.0.40
codegen_flags: <defaults>
</compile_context>

<pallas_src>
import functools

import jax
import jax.numpy as jnp
from jax.experimental import pallas as pl
from jax.experimental.pallas import tpu as pltpu


def mha_kernel(x_ref, wqkv_ref, wp_ref, bias_ref, o_ref, cat_ref, *,
               num_heads, head_size):
    # x_ref:    (Bb, T, C)  f32   block of batch elements
    # wqkv_ref: (C, 3C)     bf16  fused [Wq*scale | Wk | Wv], heads along output dim
    # wp_ref:   (C, C)      bf16  output projection, pre-transposed: y = cat @ wp + b
    # bias_ref: (1, C)      f32   output projection bias
    # o_ref:    (Bb, T, C)  f32
    # cat_ref:  (Bb, T, C)  f32   VMEM scratch holding concatenated head outputs
    Bb, T, C = x_ref.shape
    H, D = num_heads, head_size
    M = Bb * T

    # Single bf16 cast of the activation block; leading-dim merge reshape only
    # (minor dim unchanged -> no relayout).
    x_bf = x_ref[...].reshape(M, C).astype(jnp.bfloat16)                 # (M, C)

    # One full-width MXU matmul for all heads' Q, K, V (bf16 in, f32 accumulate).
    qkv = jnp.dot(x_bf, wqkv_ref[...], preferred_element_type=jnp.float32)   # (M, 3C)
    # Cast once, then slice per head from the bf16 copy (no redundant casts).
    qkv_bf = qkv.astype(jnp.bfloat16).reshape(Bb, T, 3 * C)              # (Bb, T, 3C)

    # Per-head attention; H is a small static constant, unrolled at trace time.
    for h in range(H):
        q = qkv_bf[:, :, 0 * C + h * D:0 * C + (h + 1) * D]             # (Bb, T, D)
        k = qkv_bf[:, :, 1 * C + h * D:1 * C + (h + 1) * D]             # (Bb, T, D)
        v = qkv_bf[:, :, 2 * C + h * D:2 * C + (h + 1) * D]             # (Bb, T, D)

        # scale already folded into Wq
        s = jnp.einsum('bqd,bkd->bqk', q, k,
                       preferred_element_type=jnp.float32)              # (Bb, T, T) f32

        # numerically-stable softmax in f32; denominator reciprocal on the EUP
        s = s - jnp.max(s, axis=-1, keepdims=True)
        p = jnp.exp(s)
        p = p * pl.reciprocal(jnp.sum(p, axis=-1, keepdims=True), approx=True)

        o_h = jnp.einsum('bqk,bkd->bqd', p.astype(jnp.bfloat16), v,
                         preferred_element_type=jnp.float32)             # (Bb, T, D)

        # Scatter into the concatenation scratch at a static lane offset
        # (replaces the lane-axis jnp.concatenate).
        cat_ref[:, :, h * D:(h + 1) * D] = o_h

    # Single C-deep projection matmul over all Bb*T rows + bias epilogue.
    cat_bf = cat_ref[...].reshape(M, C).astype(jnp.bfloat16)             # (M, C)
    out = jnp.dot(cat_bf, wp_ref[...],
                  preferred_element_type=jnp.float32) + bias_ref[...]    # (M, C) f32
    o_ref[...] = out.reshape(Bb, T, C).astype(o_ref.dtype)


def _pick_block_batch(B, T):
    """Largest divisor Bb of B such that (a) >= 2 grid steps remain when B >= 2
    (keeps both v7x TensorCores busy; no-op on v5e/v6e), and (b) we stop growing
    once Bb*T reaches ~256 rows (fills the v6e/v7x MXU height)."""
    bb = 1
    for cand in range(1, B + 1):
        if B % cand:
            continue
        if B >= 2 and B // cand < 2:
            break
        bb = cand
        if bb * T >= 256:
            break
    return bb


def multi_head_attention(x, wq, wk, wv, w_proj, b_proj):
    """
    x:        (B, T, C)  float32
    wq/wk/wv: (H, C, D)  stacked per-head projection matrices (already transposed
              so that q_h = x @ wq[h], matching nn.Linear(weight.T)).
    w_proj:   (C, C)  PyTorch Linear weight (out, in); y = cat @ w_proj.T + b_proj
    b_proj:   (C,)
    """
    B, T, C = x.shape
    H, _, D = wq.shape
    assert H * D == C, "num_heads * head_size must equal n_embd"

    # NOTE: the PyTorch module scales scores by C**-0.5 with C = n_embd (not
    # head size).  Keep it that way; fold the scale into Wq on the host, BEFORE
    # the bf16 cast (avoids double rounding).
    scale = jnp.float32(C) ** jnp.float32(-0.5)

    wq_full = jnp.transpose(wq, (1, 0, 2)).reshape(C, C) * scale
    wk_full = jnp.transpose(wk, (1, 0, 2)).reshape(C, C)
    wv_full = jnp.transpose(wv, (1, 0, 2)).reshape(C, C)
    # Weights handed to the kernel in bf16 (half the DMA / VMEM, no in-kernel casts).
    wqkv = jnp.concatenate([wq_full, wk_full, wv_full], axis=-1).astype(jnp.bfloat16)
    wpT = jnp.transpose(w_proj).astype(jnp.bfloat16)                    # (C, C): cat @ W^T
    bias2d = b_proj.reshape(1, C).astype(jnp.float32)

    Bb = _pick_block_batch(B, T)
    grid = (B // Bb,)

    out = pl.pallas_call(
        functools.partial(mha_kernel, num_heads=H, head_size=D),
        out_shape=jax.ShapeDtypeStruct((B, T, C), jnp.float32),
        grid_spec=pltpu.PrefetchScalarGridSpec(
            num_scalar_prefetch=0,
            grid=grid,
            in_specs=[
                pl.BlockSpec((Bb, T, C), lambda b: (b, 0, 0)),    # x, Bb batch elements per step
                pl.BlockSpec((C, 3 * C), lambda b: (0, 0)),       # fused QKV weight (constant block)
                pl.BlockSpec((C, C), lambda b: (0, 0)),           # projection weight (constant block)
                pl.BlockSpec((1, C), lambda b: (0, 0)),           # projection bias
            ],
            out_specs=pl.BlockSpec((Bb, T, C), lambda b: (b, 0, 0)),
            scratch_shapes=[pltpu.VMEM((Bb, T, C), jnp.float32)],  # head-concat scratch
        ),
        compiler_params=pltpu.CompilerParams(
            dimension_semantics=("parallel",),
        ),
    )(x, wqkv, wpT, bias2d)
    return out


def reference(x, wq, wk, wv, w_proj, b_proj):
    """Pure-JAX f32 reference mirroring the PyTorch forward (eval mode)."""
    B, T, C = x.shape
    H, _, D = wq.shape
    heads = []
    for h in range(H):
        q = x @ wq[h]
        k = x @ wk[h]
        v = x @ wv[h]
        wei = (q @ jnp.swapaxes(k, -2, -1)) * (C ** -0.5)
        wei = jax.nn.softmax(wei, axis=-1)
        heads.append(wei @ v)
    cat = jnp.concatenate(heads, axis=-1)                               # (B, T, C)
    return cat @ w_proj.T + b_proj


if __name__ == "__main__":
    # small shapes consistent with the module
    B, T = 2, 8
    num_heads, head_size = 4, 8
    n_embd = num_heads * head_size                                      # 32

    key = jax.random.PRNGKey(0)
    k1, k2, k3, k4, k5, k6 = jax.random.split(key, 6)

    x = jax.random.normal(k1, (B, T, n_embd), dtype=jnp.float32)

    # deterministic synthetic parameters (shapes follow nn.Linear definitions)
    wq = 0.05 * jax.random.normal(k2, (num_heads, n_embd, head_size), dtype=jnp.float32)
    wk = 0.05 * jax.random.normal(k3, (num_heads, n_embd, head_size), dtype=jnp.float32)
    wv = 0.05 * jax.random.normal(k4, (num_heads, n_embd, head_size), dtype=jnp.float32)
    w_proj = 0.05 * jax.random.normal(k5, (n_embd, n_embd), dtype=jnp.float32)  # (out, in)
    b_proj = 0.05 * jax.random.normal(k6, (n_embd,), dtype=jnp.float32)

    out = multi_head_attention(x, wq, wk, wv, w_proj, b_proj)
    out = jax.block_until_ready(out)

    ref = reference(x, wq, wk, wv, w_proj, b_proj)
    assert out.shape == (B, T, n_embd)
    # bf16 MXU operands with f32 accumulation (+ approx reciprocal) -> wider
    # tolerance vs the f32 reference
    assert jnp.allclose(out, ref, atol=2e-2, rtol=2e-2), "mismatch vs reference"

    print("KERNEL_OK")
</pallas_src>

<mosaic_0001>
module attributes {stable_mosaic.version = 11 : i64} {
  func.func @mha_kernel(%arg0: i32, %arg1: memref<1x8x32xf32, #tpu.memory_space<vmem>>, %arg2: memref<32x96xbf16, #tpu.memory_space<vmem>>, %arg3: memref<32x32xbf16, #tpu.memory_space<vmem>>, %arg4: memref<1x32xf32, #tpu.memory_space<vmem>>, %arg5: memref<1x8x32xf32, #tpu.memory_space<vmem>>, %arg6: memref<1x8x32xf32, #tpu.memory_space<vmem>>) attributes {dimension_semantics = [#tpu.dimension_semantics<parallel>], iteration_bounds = array<i64: 2>, scalar_prefetch = 0 : i64, scratch_operands = 1 : i64, tpu.core_type = #tpu.core_type<tc>, window_params = [{transform_indices = @transform_0, window_bounds = array<i64: 1, 8, 32>}, {pipeline_mode = #tpu.pipeline_mode<synchronous>, transform_indices = @transform_1, window_bounds = array<i64: 32, 96>}, {pipeline_mode = #tpu.pipeline_mode<synchronous>, transform_indices = @transform_2, window_bounds = array<i64: 32, 32>}, {pipeline_mode = #tpu.pipeline_mode<synchronous>, transform_indices = @transform_3, window_bounds = array<i64: 1, 32>}, {transform_indices = @transform_4, window_bounds = array<i64: 1, 8, 32>}]} {
    %c0 = arith.constant 0 : index
    %c0_0 = arith.constant 0 : index
    %c0_1 = arith.constant 0 : index
    %0 = vector.load %arg1[%c0, %c0_0, %c0_1] : memref<1x8x32xf32, #tpu.memory_space<vmem>>, vector<1x8x32xf32>
    %1 = vector.shape_cast %0 : vector<1x8x32xf32> to vector<8x32xf32>
    %2 = arith.truncf %1 : vector<8x32xf32> to vector<8x32xbf16>
    %c0_2 = arith.constant 0 : index
    %c0_3 = arith.constant 0 : index
    %3 = vector.load %arg2[%c0_2, %c0_3] : memref<32x96xbf16, #tpu.memory_space<vmem>>, vector<32x96xbf16>
    %cst = arith.constant dense<0.000000e+00> : vector<8x96xf32>
    %4 = tpu.matmul %2, %3, %cst {dimension_numbers = #tpu.dot_dimension_numbers<[1], [0], [0], [1], [0, 0, 1, 1], [], []>} : vector<8x32xbf16>, vector<32x96xbf16>, vector<8x96xf32> -> vector<8x96xf32>
    %5 = arith.truncf %4 : vector<8x96xf32> to vector<8x96xbf16>
    %6 = vector.shape_cast %5 : vector<8x96xbf16> to vector<1x8x96xbf16>
    %7 = vector.extract_strided_slice %6 {offsets = [0, 0, 0], sizes = [1, 8, 8], strides = [1, 1, 1]} : vector<1x8x96xbf16> to vector<1x8x8xbf16>
    %8 = vector.extract_strided_slice %6 {offsets = [0, 0, 32], sizes = [1, 8, 8], strides = [1, 1, 1]} : vector<1x8x96xbf16> to vector<1x8x8xbf16>
    %9 = vector.extract_strided_slice %6 {offsets = [0, 0, 64], sizes = [1, 8, 8], strides = [1, 1, 1]} : vector<1x8x96xbf16> to vector<1x8x8xbf16>
    "tpu.trace_start"() <{level = 10 : i32, message = "bqd,bkd->bqk"}> : () -> ()
    %cst_4 = arith.constant dense<0.000000e+00> : vector<1x8x8xf32>
    %10 = tpu.matmul %7, %8, %cst_4 {dimension_numbers = #tpu.dot_dimension_numbers<[2], [2], [1], [1], [0, 0, 0, 1, 1, 1], [0], [0]>} : vector<1x8x8xbf16>, vector<1x8x8xbf16>, vector<1x8x8xf32> -> vector<1x8x8xf32>
    "tpu.trace_stop"() : () -> ()
    %cst_5 = arith.constant dense<0xFF800000> : vector<1x8xf32>
    %11 = vector.multi_reduction <maximumf>, %10, %cst_5 [2] : vector<1x8x8xf32> to vector<1x8xf32>
    %12 = vector.shape_cast %11 : vector<1x8xf32> to vector<1x8x1xf32>
    %13 = vector.broadcast %12 : vector<1x8x1xf32> to vector<1x8x8xf32>
    %14 = arith.subf %10, %13 : vector<1x8x8xf32>
    %15 = math.exp %14 : vector<1x8x8xf32>
    %cst_6 = arith.constant dense<0.000000e+00> : vector<1x8xf32>
    %16 = vector.multi_reduction <add>, %15, %cst_6 [2] : vector<1x8x8xf32> to vector<1x8xf32>
    %17 = vector.shape_cast %16 : vector<1x8xf32> to vector<1x8x1xf32>
    %18 = tpu.reciprocal %17 {approx = true} : vector<1x8x1xf32> -> vector<1x8x1xf32>
    %19 = vector.broadcast %18 : vector<1x8x1xf32> to vector<1x8x8xf32>
    %20 = arith.mulf %15, %19 : vector<1x8x8xf32>
    %21 = arith.truncf %20 : vector<1x8x8xf32> to vector<1x8x8xbf16>
    "tpu.trace_start"() <{level = 10 : i32, message = "bqk,bkd->bqd"}> : () -> ()
    %cst_7 = arith.constant dense<0.000000e+00> : vector<1x8x8xf32>
    %22 = tpu.matmul %21, %9, %cst_7 {dimension_numbers = #tpu.dot_dimension_numbers<[2], [1], [1], [2], [0, 0, 0, 1, 1, 2], [0], [0]>} : vector<1x8x8xbf16>, vector<1x8x8xbf16>, vector<1x8x8xf32> -> vector<1x8x8xf32>
    "tpu.trace_stop"() : () -> ()
    %c0_8 = arith.constant 0 : index
    %c0_9 = arith.constant 0 : index
    %c0_10 = arith.constant 0 : index
    %23 = vector.load %arg6[%c0_8, %c0_9, %c0_10] : memref<1x8x32xf32, #tpu.memory_space<vmem>>, vector<1x8x8xf32>
    tpu.vector_store %arg6[%c0_8, %c0_9, %c0_10], %22 {strides = array<i32>} : memref<1x8x32xf32, #tpu.memory_space<vmem>>, vector<1x8x8xf32>,
    %24 = vector.extract_strided_slice %6 {offsets = [0, 0, 8], sizes = [1, 8, 8], strides = [1, 1, 1]} : vector<1x8x96xbf16> to vector<1x8x8xbf16>
    %25 = vector.extract_strided_slice %6 {offsets = [0, 0, 40], sizes = [1, 8, 8], strides = [1, 1, 1]} : vector<1x8x96xbf16> to vector<1x8x8xbf16>
    %26 = vector.extract_strided_slice %6 {offsets = [0, 0, 72], sizes = [1, 8, 8], strides = [1, 1, 1]} : vector<1x8x96xbf16> to vector<1x8x8xbf16>
    "tpu.trace_start"() <{level = 10 : i32, message = "bqd,bkd->bqk"}> : () -> ()
    %cst_11 = arith.constant dense<0.000000e+00> : vector<1x8x8xf32>
    %27 = tpu.matmul %24, %25, %cst_11 {dimension_numbers = #tpu.dot_dimension_numbers<[2], [2], [1], [1], [0, 0, 0, 1, 1, 1], [0], [0]>} : vector<1x8x8xbf16>, vector<1x8x8xbf16>, vector<1x8x8xf32> -> vector<1x8x8xf32>
    "tpu.trace_stop"() : () -> ()
    %cst_12 = arith.constant dense<0xFF800000> : vector<1x8xf32>
    %28 = vector.multi_reduction <maximumf>, %27, %cst_12 [2] : vector<1x8x8xf32> to vector<1x8xf32>
    %29 = vector.shape_cast %28 : vector<1x8xf32> to vector<1x8x1xf32>
    %30 = vector.broadcast %29 : vector<1x8x1xf32> to vector<1x8x8xf32>
    %31 = arith.subf %27, %30 : vector<1x8x8xf32>
    %32 = math.exp %31 : vector<1x8x8xf32>
    %cst_13 = arith.constant dense<0.000000e+00> : vector<1x8xf32>
    %33 = vector.multi_reduction <add>, %32, %cst_13 [2] : vector<1x8x8xf32> to vector<1x8xf32>
    %34 = vector.shape_cast %33 : vector<1x8xf32> to vector<1x8x1xf32>
    %35 = tpu.reciprocal %34 {approx = true} : vector<1x8x1xf32> -> vector<1x8x1xf32>
    %36 = vector.broadcast %35 : vector<1x8x1xf32> to vector<1x8x8xf32>
    %37 = arith.mulf %32, %36 : vector<1x8x8xf32>
    %38 = arith.truncf %37 : vector<1x8x8xf32> to vector<1x8x8xbf16>
    "tpu.trace_start"() <{level = 10 : i32, message = "bqk,bkd->bqd"}> : () -> ()
    %cst_14 = arith.constant dense<0.000000e+00> : vector<1x8x8xf32>
    %39 = tpu.matmul %38, %26, %cst_14 {dimension_numbers = #tpu.dot_dimension_numbers<[2], [1], [1], [2], [0, 0, 0, 1, 1, 2], [0], [0]>} : vector<1x8x8xbf16>, vector<1x8x8xbf16>, vector<1x8x8xf32> -> vector<1x8x8xf32>
    "tpu.trace_stop"() : () -> ()
    %c0_15 = arith.constant 0 : index
    %c0_16 = arith.constant 0 : index
    %c8 = arith.constant 8 : index
    %40 = vector.load %arg6[%c0_15, %c0_16, %c8] : memref<1x8x32xf32, #tpu.memory_space<vmem>>, vector<1x8x8xf32>
    tpu.vector_store %arg6[%c0_15, %c0_16, %c8], %39 {strides = array<i32>} : memref<1x8x32xf32, #tpu.memory_space<vmem>>, vector<1x8x8xf32>,
    %41 = vector.extract_strided_slice %6 {offsets = [0, 0, 16], sizes = [1, 8, 8], strides = [1, 1, 1]} : vector<1x8x96xbf16> to vector<1x8x8xbf16>
    %42 = vector.extract_strided_slice %6 {offsets = [0, 0, 48], sizes = [1, 8, 8], strides = [1, 1, 1]} : vector<1x8x96xbf16> to vector<1x8x8xbf16>
    %43 = vector.extract_strided_slice %6 {offsets = [0, 0, 80], sizes = [1, 8, 8], strides = [1, 1, 1]} : vector<1x8x96xbf16> to vector<1x8x8xbf16>
    "tpu.trace_start"() <{level = 10 : i32, message = "bqd,bkd->bqk"}> : () -> ()
    %cst_17 = arith.constant dense<0.000000e+00> : vector<1x8x8xf32>
    %44 = tpu.matmul %41, %42, %cst_17 {dimension_numbers = #tpu.dot_dimension_numbers<[2], [2], [1], [1], [0, 0, 0, 1, 1, 1], [0], [0]>} : vector<1x8x8xbf16>, vector<1x8x8xbf16>, vector<1x8x8xf32> -> vector<1x8x8xf32>
    "tpu.trace_stop"() : () -> ()
    %cst_18 = arith.constant dense<0xFF800000> : vector<1x8xf32>
    %45 = vector.multi_reduction <maximumf>, %44, %cst_18 [2] : vector<1x8x8xf32> to vector<1x8xf32>
    %46 = vector.shape_cast %45 : vector<1x8xf32> to vector<1x8x1xf32>
    %47 = vector.broadcast %46 : vector<1x8x1xf32> to vector<1x8x8xf32>
    %48 = arith.subf %44, %47 : vector<1x8x8xf32>
    %49 = math.exp %48 : vector<1x8x8xf32>
    %cst_19 = arith.constant dense<0.000000e+00> : vector<1x8xf32>
    %50 = vector.multi_reduction <add>, %49, %cst_19 [2] : vector<1x8x8xf32> to vector<1x8xf32>
    %51 = vector.shape_cast %50 : vector<1x8xf32> to vector<1x8x1xf32>
    %52 = tpu.reciprocal %51 {approx = true} : vector<1x8x1xf32> -> vector<1x8x1xf32>
    %53 = vector.broadcast %52 : vector<1x8x1xf32> to vector<1x8x8xf32>
    %54 = arith.mulf %49, %53 : vector<1x8x8xf32>
    %55 = arith.truncf %54 : vector<1x8x8xf32> to vector<1x8x8xbf16>
    "tpu.trace_start"() <{level = 10 : i32, message = "bqk,bkd->bqd"}> : () -> ()
    %cst_20 = arith.constant dense<0.000000e+00> : vector<1x8x8xf32>
    %56 = tpu.matmul %55, %43, %cst_20 {dimension_numbers = #tpu.dot_dimension_numbers<[2], [1], [1], [2], [0, 0, 0, 1, 1, 2], [0], [0]>} : vector<1x8x8xbf16>, vector<1x8x8xbf16>, vector<1x8x8xf32> -> vector<1x8x8xf32>
    "tpu.trace_stop"() : () -> ()
    %c0_21 = arith.constant 0 : index
    %c0_22 = arith.constant 0 : index
    %c16 = arith.constant 16 : index
    %57 = vector.load %arg6[%c0_21, %c0_22, %c16] : memref<1x8x32xf32, #tpu.memory_space<vmem>>, vector<1x8x8xf32>
    tpu.vector_store %arg6[%c0_21, %c0_22, %c16], %56 {strides = array<i32>} : memref<1x8x32xf32, #tpu.memory_space<vmem>>, vector<1x8x8xf32>,
    %58 = vector.extract_strided_slice %6 {offsets = [0, 0, 24], sizes = [1, 8, 8], strides = [1, 1, 1]} : vector<1x8x96xbf16> to vector<1x8x8xbf16>
    %59 = vector.extract_strided_slice %6 {offsets = [0, 0, 56], sizes = [1, 8, 8], strides = [1, 1, 1]} : vector<1x8x96xbf16> to vector<1x8x8xbf16>
    %60 = vector.extract_strided_slice %6 {offsets = [0, 0, 88], sizes = [1, 8, 8], strides = [1, 1, 1]} : vector<1x8x96xbf16> to vector<1x8x8xbf16>
    "tpu.trace_start"() <{level = 10 : i32, message = "bqd,bkd->bqk"}> : () -> ()
    %cst_23 = arith.constant dense<0.000000e+00> : vector<1x8x8xf32>
    %61 = tpu.matmul %58, %59, %cst_23 {dimension_numbers = #tpu.dot_dimension_numbers<[2], [2], [1], [1], [0, 0, 0, 1, 1, 1], [0], [0]>} : vector<1x8x8xbf16>, vector<1x8x8xbf16>, vector<1x8x8xf32> -> vector<1x8x8xf32>
    "tpu.trace_stop"() : () -> ()
    %cst_24 = arith.constant dense<0xFF800000> : vector<1x8xf32>
    %62 = vector.multi_reduction <maximumf>, %61, %cst_24 [2] : vector<1x8x8xf32> to vector<1x8xf32>
    %63 = vector.shape_cast %62 : vector<1x8xf32> to vector<1x8x1xf32>
    %64 = vector.broadcast %63 : vector<1x8x1xf32> to vector<1x8x8xf32>
    %65 = arith.subf %61, %64 : vector<1x8x8xf32>
    %66 = math.exp %65 : vector<1x8x8xf32>
    %cst_25 = arith.constant dense<0.000000e+00> : vector<1x8xf32>
    %67 = vector.multi_reduction <add>, %66, %cst_25 [2] : vector<1x8x8xf32> to vector<1x8xf32>
    %68 = vector.shape_cast %67 : vector<1x8xf32> to vector<1x8x1xf32>
    %69 = tpu.reciprocal %68 {approx = true} : vector<1x8x1xf32> -> vector<1x8x1xf32>
    %70 = vector.broadcast %69 : vector<1x8x1xf32> to vector<1x8x8xf32>
    %71 = arith.mulf %66, %70 : vector<1x8x8xf32>
    %72 = arith.truncf %71 : vector<1x8x8xf32> to vector<1x8x8xbf16>
    "tpu.trace_start"() <{level = 10 : i32, message = "bqk,bkd->bqd"}> : () -> ()
    %cst_26 = arith.constant dense<0.000000e+00> : vector<1x8x8xf32>
    %73 = tpu.matmul %72, %60, %cst_26 {dimension_numbers = #tpu.dot_dimension_numbers<[2], [1], [1], [2], [0, 0, 0, 1, 1, 2], [0], [0]>} : vector<1x8x8xbf16>, vector<1x8x8xbf16>, vector<1x8x8xf32> -> vector<1x8x8xf32>
    "tpu.trace_stop"() : () -> ()
    %c0_27 = arith.constant 0 : index
    %c0_28 = arith.constant 0 : index
    %c24 = arith.constant 24 : index
    %74 = vector.load %arg6[%c0_27, %c0_28, %c24] : memref<1x8x32xf32, #tpu.memory_space<vmem>>, vector<1x8x8xf32>
    tpu.vector_store %arg6[%c0_27, %c0_28, %c24], %73 {strides = array<i32>} : memref<1x8x32xf32, #tpu.memory_space<vmem>>, vector<1x8x8xf32>,
    %c0_29 = arith.constant 0 : index
    %c0_30 = arith.constant 0 : index
    %c0_31 = arith.constant 0 : index
    %75 = vector.load %arg6[%c0_29, %c0_30, %c0_31] : memref<1x8x32xf32, #tpu.memory_space<vmem>>, vector<1x8x32xf32>
    %76 = vector.shape_cast %75 : vector<1x8x32xf32> to vector<8x32xf32>
    %77 = arith.truncf %76 : vector<8x32xf32> to vector<8x32xbf16>
    %c0_32 = arith.constant 0 : index
    %c0_33 = arith.constant 0 : index
    %78 = vector.load %arg3[%c0_32, %c0_33] : memref<32x32xbf16, #tpu.memory_space<vmem>>, vector<32x32xbf16>
    %cst_34 = arith.constant dense<0.000000e+00> : vector<8x32xf32>
    %79 = tpu.matmul %77, %78, %cst_34 {dimension_numbers = #tpu.dot_dimension_numbers<[1], [0], [0], [1], [0, 0, 1, 1], [], []>} : vector<8x32xbf16>, vector<32x32xbf16>, vector<8x32xf32> -> vector<8x32xf32>
    %c0_35 = arith.constant 0 : index
    %c0_36 = arith.constant 0 : index
    %80 = vector.load %arg4[%c0_35, %c0_36] : memref<1x32xf32, #tpu.memory_space<vmem>>, vector<1x32xf32>
    %81 = vector.broadcast %80 : vector<1x32xf32> to vector<8x32xf32>
    %82 = arith.addf %79, %81 : vector<8x32xf32>
    %83 = vector.shape_cast %82 : vector<8x32xf32> to vector<1x8x32xf32>
    %c0_37 = arith.constant 0 : index
    %c0_38 = arith.constant 0 : index
    %c0_39 = arith.constant 0 : index
    %84 = vector.load %arg5[%c0_37, %c0_38, %c0_39] : memref<1x8x32xf32, #tpu.memory_space<vmem>>, vector<1x8x32xf32>
    tpu.vector_store %arg5[%c0_37, %c0_38, %c0_39], %83 {strides = array<i32>} : memref<1x8x32xf32, #tpu.memory_space<vmem>>, vector<1x8x32xf32>,
    return
  }
  func.func @transform_0(%arg0: i32) -> (i32, i32, i32) {
    %c0_i32 = arith.constant 0 : i32
    %c0_i32_0 = arith.constant 0 : i32
    %c0_i32_1 = arith.constant 0 : i32
    return %arg0, %c0_i32, %c0_i32_0 : i32, i32, i32
  }
  func.func @transform_1(%arg0: i32) -> (i32, i32) {
    %c0_i32 = arith.constant 0 : i32
    %c0_i32_0 = arith.constant 0 : i32
    %c0_i32_1 = arith.constant 0 : i32
    return %c0_i32, %c0_i32_0 : i32, i32
  }
  func.func @transform_2(%arg0: i32) -> (i32, i32) {
    %c0_i32 = arith.constant 0 : i32
    %c0_i32_0 = arith.constant 0 : i32
    %c0_i32_1 = arith.constant 0 : i32
    return %c0_i32, %c0_i32_0 : i32, i32
  }
  func.func @transform_3(%arg0: i32) -> (i32, i32) {
    %c0_i32 = arith.constant 0 : i32
    %c0_i32_0 = arith.constant 0 : i32
    %c0_i32_1 = arith.constant 0 : i32
    return %c0_i32, %c0_i32_0 : i32, i32
  }
  func.func @transform_4(%arg0: i32) -> (i32, i32, i32) {
    %c0_i32 = arith.constant 0 : i32
    %c0_i32_0 = arith.constant 0 : i32
    %c0_i32_1 = arith.constant 0 : i32
    return %arg0, %c0_i32, %c0_i32_0 : i32, i32, i32
  }
}

</mosaic_0001>

<bundles_post_ra>
// kernel: tpu_custom_call.1
= control target key start
LH: loop header
LB: loop body
LE: loop exit
PB: predicated region body
PF: predicated region fallthrough
CT: control target
= control target key end

     0   :  { %9 = vsyncpa [#allocation4], 0  ;;  %s1219_s0 = inlined_call_operand.hbm [shape: f32[2,8,32], index: 0, kind: input, shape index: {}]   ;;  %s1220_s1 = inlined_call_operand.hbm [shape: bf16[32,96], index: 1, kind: input, shape index: {}]   ;;  %s1221_s2 = inlined_call_operand.hbm [shape: bf16[32,32], index: 2, kind: input, shape index: {}]   ;;  %s1222_s3 = inlined_call_operand.vmem [shape: f32[1,32], index: 3, kind: input, shape index: {}]   ;;  %s1223_s4 = inlined_call_operand.hbm [shape: f32[2,8,32], index: 4, kind: output, shape index: {}]  }
   0x1   :  { %11 = vsyncpa [#allocation4 + $0x1], 0 }
   0x2   :  { %12 = vsyncpa [#allocation7], 0 }
   0x3   :  { %13 = vsyncpa [#allocation5], 0 }
   0x4   :  { %15 = vsyncpa [#allocation5 + $0x1], 0  ;;  %s1026_s15 = smov 0   ;;  %s1028_s16 = smov 0  }
   0x5   :  { %s1030_s17 = smov 0   ;;  %s1032_s18 = smov 0  }
   0x6 LB: > { %s152_s21 = sshll.u32 %s1220_s1, 4  ;;  %s1050_s22 = sadd.s32 4294967295, %s981_s18   ;;  %s981_s18 = sphi %s1032_s18, %s1234_s18   ;;  %s977_s17 = sphi %s1030_s17, %s1233_s17   ;;  %s973_s16 = sphi %s1028_s16, %s1232_s16   ;;  %s969_s15 = sphi %s1026_s15, %s1231_s15   ;;  %s153_s21 = int_to_ptr.hbm [resolvable:$true] %s152_s21 }
   0x7   : > { %p676_p0 = scmp.ge.s32.totalorder %s981_s18, 1  ;;  %p42_p1 = scmp.eq.s32.totalorder %s1050_s22, 0 }
   0x8   : > { %p141_p2 = scmp.lt.s32.totalorder %s981_s18, 3  ;;  %s983_s24 = smov [#allocation6]  }
   0x9   : > { %s154_s25 = sshll.u32 %s983_s24, 4  ;;  %s166_s28 = sshll.u32 %s1221_s2, 4  ;;  %s155_s25 = int_to_ptr.vmem [resolvable:$true] %s154_s25  ;;  %s167_s28 = int_to_ptr.hbm [resolvable:$true] %s166_s28 }
   0xa   : > { %p1055_p3 = pnand %p676_p0, %p141_p2  ;;  %s984_s29 = smov [#allocation8]  }
   0xb   : > { %s168_s30 = sshll.u32 %s984_s29, 4  ;;  %s985_s5 = smov 64   ;;  %s169_s30 = int_to_ptr.vmem [resolvable:$true] %s168_s30 }
   0xc   : > { %p733_p4 = pneg %p1055_p3  ;;  %s986_s6 = smov 4  }
   0xd   : > { %s675_s7 = sadd.s32 4294967294, %s981_s18   ;;  %s1069_s8 = sadd.s32 1, %s981_s18  }
   0xe   : > { %p734_p6 = pnand %p733_p4, %p42_p1  ;;  %s25_s9 = ssub.s32 %s981_s18, %s1069_s8 }
   0xf   : > { %s28_s10 = sadd.s32 1, %s977_s17  ;;  %p26_p7 = scmp.eq.s32.totalorder %s25_s9, 0 }
  0x10   : > { %736 = dma.hbm_to_vmem [thread:$0]  (!%p734_p6), %s153_s21, 256, %s155_s25, [#allocation7], %s985_s5, %s985_s5, %s986_s6  }
  0x11   : > { %739 = dma.hbm_to_vmem [thread:$0]  (!%p734_p6), %s167_s28, 256, %s169_s30, [#allocation7], %s985_s5, %s985_s5, %s986_s6  }
  0x12   : > { %p35_p8 = scmp.ne.s32.totalorder %s977_s17, %s973_s16  ;;  %p36_p9 = scmp.eq.s32.totalorder %s981_s18, 0 }
  0x13   : > { %p41_p10 = scmp.ne.s32.totalorder %s973_s16, %s969_s15  ;;  %p128_p13 = scmp.eq.s32.totalorder %s1050_s22, 1 }
  0x14   : > { %s1080_s11 = scalar_select %p26_p7, %s977_s17, %s28_s10  }
  0x15   : > { %p1082_p11 = por %p36_p9, %p35_p8  ;;  %p1088_p12 = por %p42_p1, %p41_p10 }
  0x16   : > { %p134_p0 = scmp.eq.s32.totalorder %s675_s7, 1  ;;  %p750_p2 = scmp.lt.s32.totalorder %s981_s18, 2 }
  0x17   : > { %s185_s14 = sand.u32 1, %s977_s17   ;;  %p1095_p4 = por %p128_p13, %p35_p8 }
  0x18   : > { %p1099_p6 = por %p134_p0, %p41_p10  ;;  %s680_s21 = sshll.u32 %s185_s14, 3 }
  0x19   : > { %s681_s24 = sshll.u32 %s981_s18, 3  ;;  %s189_s28 = scalar_lea.vmem [#allocation3], %s680_s21 }
  0x1a   : > { %s193_s27 = scalar_lea.hbm %s1219_s0, %s681_s24  ;;  %s197_s29 = sshll.u32 %s189_s28, 4  ;;  %s198_s29 = int_to_ptr.vmem [resolvable:$true] %s197_s29 }
  0x1b   : > { %s195_s30 = sshll.u32 %s193_s27, 4  ;;  %p1109_p7 = pnand %p750_p2, %p1082_p11  ;;  %s196_s30 = int_to_ptr.hbm [resolvable:$true] %s195_s30 }
  0x1c   : > { %s186_s6 = scalar_lea.sflag [#allocation4], %s185_s14  ;;  %s881_s7 = sshra.s32 %s196_s30, 4  ;;  %s882_s7 = int_to_ptr.hbm [resolvable:$true] %s881_s7 }
  0x1d   : > { %s883_s9 = scalar_lea.hbm %s882_s7, 8  ;;  %p885_p9 = pneg %p1109_p7 }
  0x1e   : > { %p884_p8 = scmp.ne.s32.totalorder %s882_s7, %s883_s9  ;;  %s888_s24 = scalar_lea.hbm %s1219_s0, 16 }
  0x1f   : > { %p889_p11 = scmp.lt.s32.totalorder %s882_s7, %s1219_s0  ;;  %p890_p0 = scmp.lt.s32.totalorder %s888_s24, %s883_s9 }
  0x20   : > { %p886_p10 = pnand %p885_p9, %p884_p8 }
  0x21   : > { %p891_p2 = por %p890_p0, %p889_p11 }
  0x22   : > { %p887_p13 = pneg %p886_p10 }
  0x24   : > { %p892_p5 = pnand %p891_p2, %p887_p13 }
  0x26   : > { %895 = shalt.err (!%p892_p5)
}
  0x27   : > { %743 = dma.hbm_to_vmem [thread:$0]  (!%p1109_p7), %s196_s30, 128, %s198_s29, %s186_s6  }
  0x28   : > { %206 = sbr.rel (%p1055_p3) target bundleno = 1131 (0x46b), region = 36  ;;  %s1126_s14 = sand.u32 (!%p1055_p3), 1, %s973_s16  }
  0x29   : > { %s683_s26 = sshll.u32 (!%p1055_p3), %s1126_s14, 3  ;;  %s209_s27 = scalar_lea.sflag (!%p1055_p3), [#allocation4], %s1126_s14 }
  0x2a   : > { %s212_s28 = scalar_lea.vmem (!%p1055_p3), [#allocation3], %s683_s26 }
  0x2d   : > { %956 = dma.done.wait (%p1088_p12), %s209_s27, 128  }
  0x2e   : > { %958 = vsyncadd (%p1088_p12), %s209_s27, 4294967168 }
  0x2f   : > { %960 = dma.done.wait (%p42_p1), [#allocation7], 512  }
  0x30   : > { %962 = vsyncadd (%p42_p1), [#allocation7], 4294966784  ;;  %v718_v0 = vld [vmem:[#allocation6 + $0x8] sm:$0xff]  ;;  %v717_v1 = vld [vmem:[#allocation6] sm:$0xff]  ;;  %vm267_vm0 = vcmask 261120   ;;  %s987_s23 = smov 104  }
  0x31   : > { %277 = vmatpush.bf16.msra.mxu0 %v718_v0  ;;  %v249_v2 = vld [vmem:[%s212_s28] sm:$0xff]  ;;  %s988_s13 = smov 120   ;;  %s989_s29 = smov 96   ;;  %vm290_vm1 = vcmask 64512   ;;  %vm327_vm2 = vcmask 1043456   ;;  %vm405_vm3 = vcmask 130112  }
  0x32   : > { %v250_v3 = vpack.c.bf16 %v249_v2, %v249_v2  ;;  %s990_s30 = smov 80   ;;  %s991_s5 = smov 72   ;;  %vm467_vm4 = vcmask 195712   ;;  %vm529_vm5 = vcmask 261312  }
  0x33   : > { %s992_s6 = smov 88   ;;  %s993_s7 = smov 112  }
  0x34   : > { %s994_s9 = smov 64   ;;  %s995_s10 = smov 40  }
  0x35   : > { %278 = vmatpush.bf16.msra.mxu0 %v717_v1  ;;  %s996_s21 = smov 56   ;;  %s997_s24 = smov 48  }
  0x36   : > { %s998_s25 = smov 8   ;;  %s999_s12 = smov 16  }
  0x37   : > { %s1000_s27 = smov 24   ;;  %s714_s28 = sshll.u32 %s1050_s22, 3 }
  0x38   : > { %695 = vmatmul.msk.bf16.vlgmr.msra.gmra.mxu0 %vm267_vm0, %v250_v3  ;;  %s571_s22 = scalar_lea.sflag [#allocation5], %s1126_s14 }
  0xb5   : > { %v280_v4 = vpop.f32.mrf.mxu0 }
  0xb6   : > { %v284_v5 = vpack.c.bf16 %v280_v4, %v280_v4 }
  0xb8   : > { %v286_v6 = vunpack.c.l.b16 %v284_v5 }
  0xba   : > { %v1141_v7 = vpack.c.b16 %v286_v6, %v286_v6 }
  0xbc   : > { %469 = vrot.lane.b32.xlu2 %v1141_v7, %s987_s23  ;;  %345 = vrot.lane.b32.xlu1 %v1141_v7, %s988_s13 }
  0xbd   : > { %288 = vrot.lane.b32.xlu0 %v1141_v7, %s989_s29  ;;  %v282_v8 = vpop.f32.mrf.mxu0  ;;  %s581_s29 = scalar_lea.hbm %s1223_s4, %s714_s28 }
  0xc4   : > { %409 = vrot.lane.b32.xlu2 %v1141_v7, %s990_s30  ;;  %471 = vrot.lane.b32.xlu1 %v1141_v7, %s991_s5 }
  0xc5   : > { %347 = vrot.lane.b32.xlu0 %v1141_v7, %s992_s6  ;;  %s247_s6 = scalar_lea.vmem [#allocation9], %s683_s26  ;;  %s931_s26 = scalar_lea.hbm %s1223_s4, 16 }
  0xcd   : > { %407 = vrot.lane.b32.xlu0 %v1141_v7, %s993_s7  ;;  %s583_s7 = sshll.u32 %s247_s6, 4  ;;  %s584_s7 = int_to_ptr.vmem [resolvable:$true] %s583_s7 }
 0x116   : > { %v470_v9 = vpop.permute.xlu2 %469 }
 0x11e   : > { %v410_v10 = vpop.permute.xlu2 %409 }
 0x11f   : > { %v415_v11 = vsel %vm290_vm1, %v410_v10, 0 }
 0x120   : > { %424 = vmatpush.bf16.xpose.msrb.mxu0 %v415_v11 }
 0x12e   : > { %v346_v12 = vpop.permute.xlu1 %345 }
 0x12f   : > { %v289_v13 = vpop.permute.xlu0 %288 }
 0x130   : > { %v295_v14 = vsel %vm290_vm1, %v289_v13, 0 }
 0x131   : > { %304 = vmatpush.bf16.xpose.msra.mxu1 %v295_v14 }
 0x136   : > { %v472_v15 = vpop.permute.xlu1 %471 }
 0x137   : > { %v348_v16 = vpop.permute.xlu0 %347  ;;  %v477_v17 = vsel %vm290_vm1, %v472_v15, 0 }
 0x138   : > { %696 = vmatmul.msk.bf16.vlgmr.msra.gmra.mxu1 %vm290_vm1, %v284_v5  ;;  %v353_v18 = vsel %vm290_vm1, %v348_v16, 0 }
 0x139   : > { %362 = vmatpush.bf16.xpose.msra.mxu3 %v353_v18 }
 0x13f   : > { %v408_v19 = vpop.permute.xlu0 %407 }
 0x140   : > { %698 = vmatmul.msk.bf16.vlgmr.msra.gmra.mxu3 %vm290_vm1, %v346_v12  ;;  %700 = vmatmul.msk.bf16.vlgmr.msrb.gmra.mxu0 %vm290_vm1, %v408_v19 }
 0x141   : > { %486 = vmatpush.bf16.xpose.msrb.mxu3 %v477_v17 }
 0x150   : > { %702 = vmatmul.msk.bf16.vlgmr.msrb.gmra.mxu3 %vm290_vm1, %v470_v9 }
 0x1b5   : > { %v306_v20 = vpop.f32.mrf.mxu1 }
 0x1b6   : > { %v310_v21 = vsel %vm290_vm1, %v306_v20, -inf }
 0x1b7   : > { %311 = vmax.xlane.f32.xlu1 %v310_v21  ;;  %v719_v21 = vld [vmem:[#allocation8] sm:$0xff] }
 0x1bd   : > { %v308_v22 = vpop.f32.mrf.mxu1  ;;  %v426_v23 = vpop.f32.mrf.mxu0 }
 0x1be   : > { %v430_v28 = vsel %vm290_vm1, %v426_v23, -inf }
 0x1c3   : > { %v364_v24 = vpop.f32.mrf.mxu3 }
 0x1c4   : > { %v368_v25 = vsel %vm290_vm1, %v364_v24, -inf }
 0x1c5   : > { %369 = vmax.xlane.f32.xlu2 %v368_v25  ;;  %v428_v26 = vpop.f32.mrf.mxu0 }
 0x1cb   : > { %v366_v27 = vpop.f32.mrf.mxu3 }
 0x1cc   : > { %v804_v27 = vld [vmem:[%s1222_s3] ss:$0 sm:$0xff] }
 0x1cd   : > { %431 = vmax.xlane.f32.xlu2 %v430_v28 }
 0x1d3   : > { %v488_v29 = vpop.f32.mrf.mxu3 }
 0x1d4   : > { %v492_v30 = vsel %vm290_vm1, %v488_v29, -inf }
 0x1d5   : > { %493 = vmax.xlane.f32.xlu0 %v492_v30 }
 0x1db   : > { %v490_v31 = vpop.f32.mrf.mxu3 }
 0x1e5   : > { %322 = vrot.lane.b32.xlu2 %v1141_v7, %s994_s9  ;;  %s585_s9 = sshll.u32 %s581_s29, 4  ;;  %s586_s9 = int_to_ptr.hbm [resolvable:$true] %s585_s9 }
 0x1ed   : > { %504 = vrot.lane.b32.xlu2 %v1141_v7, %s995_s10  ;;  %s925_s10 = sshra.s32 %s586_s9, 4  ;;  %s926_s10 = int_to_ptr.hbm [resolvable:$true] %s925_s10 }
 0x1ee   : > { %p932_p12 = scmp.lt.s32.totalorder %s926_s10, %s1223_s4 }
 0x22a   : > { %v312_v32 = vpop.xlane.xlu1 %311 }
 0x22b   : > { %v313_v33 = vsub.f32 %v306_v20, %v312_v32  ;;  %v720_v20 = vld [vmem:[#allocation8 + $0x8] sm:$0xff] }
 0x22c   : > { %562 = vmatpush.bf16.msra.mxu0 %v720_v20 }
 0x22d   : > { %v314_v34 = vmul.f32 1.442695, %v313_v33 }
 0x22f   : > { %805 = vpow2.f32 %v314_v34 }
 0x230   : > { %563 = vmatpush.bf16.msra.mxu0 %v719_v21 }
 0x235   : > { %v806_v35 = vpop.eup %805 }
 0x236   : > { %v316_v36 = vsel %vm290_vm1, %v806_v35, 0.0 }
 0x237   : > { %317 = vadd.xlane.f32.xlu1 %v316_v36 }
 0x238   : > { %v370_v37 = vpop.xlane.xlu2 %369 }
 0x239   : > { %v371_v40 = vsub.f32 %v364_v24, %v370_v37 }
 0x23b   : > { %v372_v42 = vmul.f32 1.442695, %v371_v40 }
 0x240   : > { %v432_v38 = vpop.xlane.xlu2 %431 }
 0x241   : > { %v433_v39 = vsub.f32 %v426_v23, %v432_v38 }
 0x243   : > { %v434_v41 = vmul.f32 1.442695, %v433_v39 }
 0x245   : > { %807 = vpow2.f32 %v434_v41 }
 0x246   : > { %809 = vpow2.f32 %v372_v42 }
 0x248   : > { %v494_v43 = vpop.xlane.xlu0 %493  ;;  %v323_v44 = vpop.permute.xlu2 %322 }
 0x249   : > { %v329_v45 = vsel %vm327_vm2, %v323_v44, 0  ;;  %v495_v47 = vsub.f32 %v488_v29, %v494_v43 }
 0x24a   : > { %338 = vmatpush.bf16.msra.mxu2 %v329_v45 }
 0x24b   : > { %v808_v46 = vpop.eup %807  ;;  %v496_v49 = vmul.f32 1.442695, %v495_v47 }
 0x24c   : > { %v436_v48 = vsel %vm290_vm1, %v808_v46, 0.0  ;;  %v810_v50 = vpop.eup %809 }
 0x24d   : > { %437 = vadd.xlane.f32.xlu0 %v436_v48  ;;  %811 = vpow2.f32 %v496_v49  ;;  %v374_v51 = vsel %vm290_vm1, %v810_v50, 0.0 }
 0x250   : > { %380 = vrot.lane.b32.xlu1 %v1141_v7, %s996_s21  ;;  %v505_v59 = vpop.permute.xlu2 %504  ;;  %s927_s21 = scalar_lea.hbm %s926_s10, 8 }
 0x251   : > { %v510_v62 = vsel %vm327_vm2, %v505_v59, 0  ;;  %p928_p1 = scmp.ne.s32.totalorder %s926_s10, %s927_s21  ;;  %p933_p7 = scmp.lt.s32.totalorder %s931_s26, %s927_s21 }
 0x253   : > { %v812_v52 = vpop.eup %811  ;;  %p929_p3 = pnand %p928_p1, %p1095_p4  ;;  %p934_p8 = por %p933_p7, %p932_p12 }
 0x254   : > { %v498_v53 = vsel %vm290_vm1, %v812_v52, 0.0 }
 0x255   : > { %375 = vadd.xlane.f32.xlu0 %v374_v51  ;;  %p930_p5 = pneg %p929_p3 }
 0x257   : > { %p935_p9 = pnand %p934_p8, %p930_p5 }
 0x25d   : > { %499 = vadd.xlane.f32.xlu0 %v498_v53 }
 0x271   : > { %442 = vrot.lane.b32.xlu0 %v1141_v7, %s997_s24 }
 0x2aa   : > { %v318_v54 = vpop.xlane.xlu1 %317 }
 0x2ab   : > { %813 = vrcp.f32 %v318_v54 }
 0x2b1   : > { %v814_v55 = vpop.eup %813 }
 0x2b2   : > { %v320_v56 = vmul.f32 %v814_v55, %v806_v35 }
 0x2b4   : > { %v321_v57 = vpack.c.bf16 %v320_v56, %v320_v56 }
 0x2b6   : > { %697 = vmatmul.msk.bf16.vlgmr.msra.gmra.mxu2 %vm290_vm1, %v321_v57 }
 0x2c0   : > { %v438_v58 = vpop.xlane.xlu0 %437 }
 0x2c2   : > { %v381_v60 = vpop.permute.xlu1 %380 }
 0x2c3   : > { %v386_v61 = vsel %vm327_vm2, %v381_v60, 0 }
 0x2c4   : > { %395 = vmatpush.bf16.msrb.mxu2 %v386_v61 }
 0x2c8   : > { %519 = vmatpush.bf16.msra.mxu2 %v510_v62  ;;  %v376_v63 = vpop.xlane.xlu0 %375 }
 0x2c9   : > { %815 = vrcp.f32 %v376_v63 }
 0x2cf   : > { %v816_v0 = vpop.eup %815 }
 0x2d0   : > { %v378_v1 = vmul.f32 %v816_v0, %v810_v50  ;;  %v500_v2 = vpop.xlane.xlu0 %499 }
 0x2d1   : > { %817 = vrcp.f32 %v500_v2 }
 0x2d2   : > { %v379_v3 = vpack.c.bf16 %v378_v1, %v378_v1  ;;  %819 = vrcp.f32 %v438_v58 }
 0x2d4   : > { %699 = vmatmul.msk.bf16.vlgmr.msrb.gmra.mxu2 %vm290_vm1, %v379_v3 }
 0x2d7   : > { %v818_v4 = vpop.eup %817 }
 0x2d8   : > { %v502_v5 = vmul.f32 %v818_v4, %v812_v52  ;;  %v820_v6 = vpop.eup %819 }
 0x2d9   : > { %v440_v7 = vmul.f32 %v820_v6, %v808_v46 }
 0x2da   : > { %v503_v8 = vpack.c.bf16 %v502_v5, %v502_v5 }
 0x2db   : > { %v441_v11 = vpack.c.bf16 %v440_v7, %v440_v7 }
 0x2e3   : > { %v443_v9 = vpop.permute.xlu0 %442 }
 0x2e4   : > { %703 = vmatmul.msk.bf16.vlgmr.msra.gmra.mxu2 %vm290_vm1, %v503_v8  ;;  %v448_v10 = vsel %vm327_vm2, %v443_v9, 0 }
 0x2e5   : > { %457 = vmatpush.bf16.msrb.mxu1 %v448_v10 }
 0x2e8   : > { %701 = vmatmul.msk.bf16.vlgmr.msrb.gmra.mxu1 %vm290_vm1, %v441_v11 }
 0x339   : > { %v340_v12 = vpop.f32.mrf.mxu2 }
 0x33a   : > { %344 = vst.msk [vmem:[#allocation2] sm:$0xff] %vm290_vm1, %v340_v12 }
 0x341   : > { %v342_v13 = vpop.f32.mrf.mxu2 }
 0x357   : > { %v397_v14 = vpop.f32.mrf.mxu2 }
 0x358   : > { %402 = vrot.lane.b32.xlu1 %v397_v14, %s998_s25 }
 0x35f   : > { %v399_v15 = vpop.f32.mrf.mxu2 }
 0x365   : > { %v459_v16 = vpop.f32.mrf.mxu1 }
 0x366   : > { %464 = vrot.lane.b32.xlu2 %v459_v16, %s999_s12 }
 0x367   : > { %v521_v17 = vpop.f32.mrf.mxu2 }
 0x368   : > { %526 = vrot.lane.b32.xlu1 %v521_v17, %s1000_s27 }
 0x36d   : > { %v461_v18 = vpop.f32.mrf.mxu1 }
 0x36f   : > { %v523_v19 = vpop.f32.mrf.mxu2 }
 0x3c0   : > { %v465_v23 = vpop.permute.xlu2 %464 }
 0x3ca   : > { %v403_v22 = vpop.permute.xlu1 %402 }
 0x3cb   : > { %406 = vst.msk [vmem:[#allocation2] sm:$0xff] %vm405_vm3, %v403_v22 }
 0x3cc   : > { %468 = vst.msk [vmem:[#allocation2] sm:$0xff] %vm467_vm4, %v465_v23 }
 0x3da   : > { %v527_v24 = vpop.permute.xlu1 %526 }
 0x3db   : > { %530 = vst.msk [vmem:[#allocation2] sm:$0xff] %vm529_vm5, %v527_v24 }
 0x3e2   : > { %v531_v25 = vld [vmem:[#allocation2] sm:$0xff] }
 0x3e3   : > { %v532_v26 = vpack.c.bf16 %v531_v25, %v531_v25 }
 0x3e5   : > { %712 = vmatmul.msk.bf16.vlgmr.msra.gmra.mxu0 %vm267_vm0, %v532_v26 }
 0x462   : > { %v565_v28 = vpop.f32.mrf.mxu0 }
 0x463   : > { %v566_v29 = vadd.f32 %v804_v27, %v565_v28 }
 0x465   : > { %569 = vst.msk [vmem:[%s247_s6] sm:$0xff] %vm267_vm0, %v566_v29 }
 0x466   : > { %938 = shalt.err (!%p935_p9)
}
 0x467   : > { %731 = dma.vmem_to_hbm [thread:$0]  (%p1095_p4), %s584_s7, 128, %s586_s9, %s571_s22  }
 0x46a   : > { %v567_v30 = vpop.f32.mrf.mxu0 }
 0x46b PF: > { %s597_s14 = sand.u32 1, %s969_s15   ;;  %p1230_p10 = scmp.ge.s32.totalorder %s981_s18, 2 }
 0x46c   : > { %s598_s28 = scalar_lea.sflag [#allocation5], %s597_s14 }
 0x46d   : > { %p745_p13 = pnand %p1230_p10, %p1099_p6 }
 0x46f   : > { %p746_p11 = pneg %p745_p13 }
 0x471   : > { %964 = dma.done.wait (%p746_p11), %s598_s28, 128  }
 0x472   : > { %966 = vsyncadd (%p746_p11), %s598_s28, 4294967168  ;;  %p18_p0 = scmp.ge.s32.totalorder %s1069_s8, 4   ;;  %s1231_s15 = smov %s973_s16 }
 0x473   : > { %s1232_s16 = smov %s977_s17  ;;  %s1233_s17 = smov %s1080_s11 }
 0x474   : > { %s1234_s18 = smov %s1069_s8  ;;  %20 = sbr.rel (!%p18_p0) target bundleno = 6 (0x6), region = 89 }
 0x479   :  { %604 = vsyncpa [#allocation4], 1 }
 0x47a   :  { %606 = vsyncpa [#allocation4 + $0x1], 1 }
 0x47b   :  { %607 = vsyncpa [#allocation7], 1 }
 0x47c   :  { %608 = vsyncpa [#allocation5], 1 }
 0x47d   :  { %610 = vsyncpa [#allocation5 + $0x1], 1 }

</bundles_post_ra>
